<compile_context>
chip_gen: v5e
topology: v5e:2x2
jax: 0.10.0
libtpu: 0.0.40
codegen_flags: <defaults>
</compile_context>

<pallas_src>
import functools

import jax
import jax.numpy as jnp
from jax.experimental import pallas as pl
from jax.experimental.pallas import tpu as pltpu


# -----------------------------------------------------------------------------
# Fused kernel: all layers + projection, whole batch, one invocation
# -----------------------------------------------------------------------------
def _fused_decoder_kernel(num_layers, adj_ref, x_ref, h_ref, *rest):
    """Fused decoder forward (batch folded into sublanes).

    adj_ref : (B*N, B*N)   block-diagonal normalized adjacency kron(I_B, A)
    x_ref   : (B*N, Do)    decoder input
    h_ref   : (L, B*N, Dh) previous hidden states
    rest    : [W_cat_l (Di+Dh, 3Dh), Whh_l (Dh, Dh), b_l (1, 3Dh)] * L,
              proj_w (Dh, Do), proj_b (1, Do),
              out_ref (B*N, Do), h_out_ref (L, B*N, Dh)   [aliased onto h_ref]
    """
    n_w = 3 * num_layers
    w_refs = rest[:n_w]
    pw_ref = rest[n_w]
    pb_ref = rest[n_w + 1]
    out_ref = rest[n_w + 2]
    h_out_ref = rest[n_w + 3]

    a = adj_ref[...]                       # (B*N, B*N), loaded once
    Dh = h_ref.shape[-1]

    out = x_ref[...]                       # (B*N, Di0)
    for l in range(num_layers):            # static unroll (per-layer shapes differ)
        w_cat = w_refs[3 * l][...]         # (Di+Dh, 3Dh)   [z | r | h]
        whh = w_refs[3 * l + 1][...]       # (Dh, Dh)
        bias = w_refs[3 * l + 2][...]      # (1, 3Dh)
        h = h_ref[l]                       # (B*N, Dh)

        # Graph propagation of [X | H] for the whole batch in one dot.
        xh = jnp.concatenate([out, h], axis=-1)                       # (B*N, Di+Dh)
        axh = jnp.dot(a, xh, preferred_element_type=jnp.float32)      # (B*N, Di+Dh)

        # Single fused gate matmul:  g = [gz | gr | gh_x]
        #   gz = (A@X)Wxz + (A@H)Whz,  gr = (A@X)Wxr + (A@H)Whr,  gh_x = (A@X)Wxh
        g = jnp.dot(axh, w_cat, preferred_element_type=jnp.float32) + bias  # (B*N, 3Dh)

        z = jax.nn.sigmoid(g[:, :Dh])
        r = jax.nn.sigmoid(g[:, Dh:2 * Dh])

        # Candidate state uses A @ (r * H).
        arh = jnp.dot(a, r * h, preferred_element_type=jnp.float32)   # (B*N, Dh)
        h_tilde = jnp.tanh(
            g[:, 2 * Dh:]
            + jnp.dot(arh, whh, preferred_element_type=jnp.float32))

        h_new = z * h + (1.0 - z) * h_tilde
        h_out_ref[l] = h_new               # one tall store per layer
        out = h_new

    # Final projection Linear(rnn_units -> output_dim), whole batch, one store.
    out_ref[...] = (jnp.dot(out, pw_ref[...], preferred_element_type=jnp.float32)
                    + pb_ref[...])


# -----------------------------------------------------------------------------
# DecoderModel.forward equivalent (single grid-less pallas_call)
# -----------------------------------------------------------------------------
def decoder_forward(inputs, hidden_state, adj, fused_layer_params, proj_w, proj_b,
                    *, node_num, output_dim, rnn_units):
    """
    inputs:       (B, node_num * output_dim)
    hidden_state: (num_layers, B, node_num * rnn_units)
    returns: output       (B, node_num, output_dim)
             hidden_state (num_layers, B, node_num * rnn_units)
    """
    B = inputs.shape[0]
    num_layers = len(fused_layer_params)
    BN = B * node_num

    # Contiguous (free) wrapper reshapes into the (B*N, D) kernel layout.
    x = inputs.reshape(BN, output_dim)
    h = hidden_state.reshape(num_layers, BN, rnn_units)

    # Block-diagonal adjacency: one propagation matmul covers the whole batch.
    adj_bd = jnp.kron(jnp.eye(B, dtype=adj.dtype), adj)          # (B*N, B*N)

    flat_w = [w for params in fused_layer_params for w in params]
    n_inputs = 3 + len(flat_w) + 2
    vmem = pl.BlockSpec(memory_space=pltpu.MemorySpace.VMEM)     # whole array in VMEM

    # Rough cost estimate (helps XLA when this call is unrolled over timesteps).
    di = output_dim
    flops = 0
    for _ in range(num_layers):
        flops += 2 * BN * BN * (di + rnn_units)          # A_bd @ [X|H]
        flops += 2 * BN * (di + rnn_units) * 3 * rnn_units  # fused gate matmul
        flops += 2 * BN * BN * rnn_units                 # A_bd @ (r*H)
        flops += 2 * BN * rnn_units * rnn_units          # @ Whh
        di = rnn_units
    flops += 2 * BN * rnn_units * output_dim             # projection
    transcendentals = num_layers * BN * 3 * rnn_units
    bytes_accessed = 4 * (BN * BN + BN * output_dim
                          + 2 * num_layers * BN * rnn_units
                          + sum(int(w.size) for w in flat_w)
                          + int(proj_w.size) + int(proj_b.size)
                          + BN * output_dim)
    ce = pl.CostEstimate(flops=int(flops), transcendentals=int(transcendentals),
                         bytes_accessed=int(bytes_accessed))

    out, h_next = pl.pallas_call(
        functools.partial(_fused_decoder_kernel, num_layers),
        out_shape=(
            jax.ShapeDtypeStruct((BN, output_dim), jnp.float32),
            jax.ShapeDtypeStruct((num_layers, BN, rnn_units), jnp.float32),
        ),
        in_specs=[vmem] * n_inputs,
        out_specs=(vmem, vmem),
        input_output_aliases={2: 1},   # new hidden state overwrites old (no extra HBM buffer)
        cost_estimate=ce,
    )(adj_bd, x, h, *flat_w, proj_w, proj_b)

    return (out.reshape(B, node_num, output_dim),
            h_next.reshape(num_layers, B, node_num * rnn_units))


# -----------------------------------------------------------------------------
# Pure-JAX reference (uses the UNFUSED weights — independent correctness check)
# -----------------------------------------------------------------------------
def _reference_forward(inputs, hidden_state, adj, raw_layer_params, proj_w, proj_b,
                       *, node_num, output_dim, rnn_units):
    B = inputs.shape[0]
    out = inputs.reshape(B, node_num, output_dim)
    hs = []
    for l, (wxz, whz, wxr, whr, wxh, whh, bz, br, bh) in enumerate(raw_layer_params):
        h = hidden_state[l].reshape(B, node_num, rnn_units)
        ax = jnp.einsum('ij,bjd->bid', adj, out)
        ah = jnp.einsum('ij,bjd->bid', adj, h)
        z = jax.nn.sigmoid(ax @ wxz + ah @ whz + bz)
        r = jax.nn.sigmoid(ax @ wxr + ah @ whr + br)
        arh = jnp.einsum('ij,bjd->bid', adj, r * h)
        h_tilde = jnp.tanh(ax @ wxh + arh @ whh + bh)
        h_new = z * h + (1.0 - z) * h_tilde
        hs.append(h_new.reshape(B, node_num * rnn_units))
        out = h_new
    proj = out @ proj_w + proj_b
    return proj.reshape(-1, node_num, output_dim), jnp.stack(hs)


# -----------------------------------------------------------------------------
# Parameter / graph construction (deterministic)
# -----------------------------------------------------------------------------
def build_normalized_adj(edge_index, edge_weight, n):
    """Dense GCN-style adjacency: D^{-1/2} (A + I) D^{-1/2}."""
    a = jnp.zeros((n, n), jnp.float32)
    a = a.at[edge_index[1], edge_index[0]].add(edge_weight)
    a = a + jnp.eye(n, dtype=jnp.float32)
    deg = a.sum(axis=1)
    d_inv_sqrt = jnp.where(deg > 0, 1.0 / jnp.sqrt(deg), 0.0)
    return d_inv_sqrt[:, None] * a * d_inv_sqrt[None, :]


def init_cell_params(key, in_dim, hid_dim):
    """Raw (unfused) graph-GRU cell parameters."""
    ks = jax.random.split(key, 9)
    s = 0.1
    wxz = s * jax.random.normal(ks[0], (in_dim, hid_dim), jnp.float32)
    whz = s * jax.random.normal(ks[1], (hid_dim, hid_dim), jnp.float32)
    wxr = s * jax.random.normal(ks[2], (in_dim, hid_dim), jnp.float32)
    whr = s * jax.random.normal(ks[3], (hid_dim, hid_dim), jnp.float32)
    wxh = s * jax.random.normal(ks[4], (in_dim, hid_dim), jnp.float32)
    whh = s * jax.random.normal(ks[5], (hid_dim, hid_dim), jnp.float32)
    bz = s * jax.random.normal(ks[6], (1, hid_dim), jnp.float32)
    br = s * jax.random.normal(ks[7], (1, hid_dim), jnp.float32)
    bh = s * jax.random.normal(ks[8], (1, hid_dim), jnp.float32)
    return (wxz, whz, wxr, whr, wxh, whh, bz, br, bh)


def fuse_cell_params(raw):
    """W_cat (Di+Dh, 3Dh) = [[Wxz|Wxr|Wxh],[Whz|Whr|0]], Whh (Dh,Dh), bias (1,3Dh)."""
    wxz, whz, wxr, whr, wxh, whh, bz, br, bh = raw
    hid_dim = whh.shape[0]
    top = jnp.concatenate([wxz, wxr, wxh], axis=1)                     # (Di, 3Dh)
    bot = jnp.concatenate(
        [whz, whr, jnp.zeros((hid_dim, hid_dim), jnp.float32)], axis=1)  # (Dh, 3Dh)
    w_cat = jnp.concatenate([top, bot], axis=0)                        # (Di+Dh, 3Dh)
    bias = jnp.concatenate([bz, br, bh], axis=1)                       # (1, 3Dh)
    return (w_cat, whh, bias)


if __name__ == "__main__":
    # Model hyper-parameters (small, consistent with the module's attrs).
    batch = 2
    node_num = 16
    output_dim = 4        # input/output feature dim per node
    rnn_units = 32        # hidden units per node
    num_layers = 2

    key = jax.random.PRNGKey(0)
    k_in, k_h, k_l0, k_l1, k_pw, k_pb = jax.random.split(key, 6)

    # sparse_idx: bidirectional ring graph, edge_weights = ones (as in module).
    src = jnp.arange(node_num, dtype=jnp.int32)
    dst = (src + 1) % node_num
    sparse_idx = jnp.concatenate(
        [jnp.stack([src, dst]), jnp.stack([dst, src])], axis=1)   # (2, 2N)
    edge_weights = jnp.ones((sparse_idx.shape[1],), jnp.float32)
    adj = build_normalized_adj(sparse_idx, edge_weights, node_num)

    # Per-layer graph-GRU cell parameters (layer 0 input dim = output_dim).
    layer_keys = [k_l0, k_l1]
    raw_layer_params = [
        init_cell_params(layer_keys[l],
                         output_dim if l == 0 else rnn_units,
                         rnn_units)
        for l in range(num_layers)
    ]
    fused_layer_params = [fuse_cell_params(p) for p in raw_layer_params]

    # Projection layer  Linear(rnn_units, output_dim).
    proj_w = 0.1 * jax.random.normal(k_pw, (rnn_units, output_dim), jnp.float32)
    proj_b = 0.1 * jax.random.normal(k_pb, (1, output_dim), jnp.float32)

    # Inputs and hidden state.
    inputs = jax.random.normal(k_in, (batch, node_num * output_dim), jnp.float32)
    hidden_state = jax.random.normal(
        k_h, (num_layers, batch, node_num * rnn_units), jnp.float32)

    fwd = jax.jit(functools.partial(
        decoder_forward, node_num=node_num, output_dim=output_dim,
        rnn_units=rnn_units))
    out, new_hidden = fwd(inputs, hidden_state, adj, fused_layer_params,
                          proj_w, proj_b)
    jax.block_until_ready((out, new_hidden))

    # Correctness check against a pure-JAX reference (unfused weights).
    ref_out, ref_hidden = _reference_forward(
        inputs, hidden_state, adj, raw_layer_params, proj_w, proj_b,
        node_num=node_num, output_dim=output_dim, rnn_units=rnn_units)

    assert out.shape == (batch, node_num, output_dim)
    assert new_hidden.shape == (num_layers, batch, node_num * rnn_units)
    assert jnp.allclose(out, ref_out, atol=1e-5, rtol=1e-5)
    assert jnp.allclose(new_hidden, ref_hidden, atol=1e-5, rtol=1e-5)
    print("KERNEL_OK")
</pallas_src>

<mosaic_0001>
module attributes {stable_mosaic.version = 11 : i64} {
  func.func @_fused_decoder_kernel(%arg0: memref<32x32xf32, #tpu.memory_space<vmem>>, %arg1: memref<32x4xf32, #tpu.memory_space<vmem>>, %arg2: memref<2x32x32xf32, #tpu.memory_space<vmem>>, %arg3: memref<36x96xf32, #tpu.memory_space<vmem>>, %arg4: memref<32x32xf32, #tpu.memory_space<vmem>>, %arg5: memref<1x96xf32, #tpu.memory_space<vmem>>, %arg6: memref<64x96xf32, #tpu.memory_space<vmem>>, %arg7: memref<32x32xf32, #tpu.memory_space<vmem>>, %arg8: memref<1x96xf32, #tpu.memory_space<vmem>>, %arg9: memref<32x4xf32, #tpu.memory_space<vmem>>, %arg10: memref<1x4xf32, #tpu.memory_space<vmem>>, %arg11: memref<32x4xf32, #tpu.memory_space<vmem>>, %arg12: memref<2x32x32xf32, #tpu.memory_space<vmem>>) attributes {dimension_semantics = [], scalar_prefetch = 0 : i64, scratch_operands = 0 : i64, tpu.core_type = #tpu.core_type<tc>} {
    %c0 = arith.constant 0 : index
    %c0_0 = arith.constant 0 : index
    %0 = vector.load %arg0[%c0, %c0_0] : memref<32x32xf32, #tpu.memory_space<vmem>>, vector<32x32xf32>
    %c0_1 = arith.constant 0 : index
    %c0_2 = arith.constant 0 : index
    %1 = vector.load %arg1[%c0_1, %c0_2] : memref<32x4xf32, #tpu.memory_space<vmem>>, vector<32x4xf32>
    %c0_3 = arith.constant 0 : index
    %c0_4 = arith.constant 0 : index
    %2 = vector.load %arg3[%c0_3, %c0_4] : memref<36x96xf32, #tpu.memory_space<vmem>>, vector<36x96xf32>
    %c0_5 = arith.constant 0 : index
    %c0_6 = arith.constant 0 : index
    %3 = vector.load %arg4[%c0_5, %c0_6] : memref<32x32xf32, #tpu.memory_space<vmem>>, vector<32x32xf32>
    %c0_7 = arith.constant 0 : index
    %c0_8 = arith.constant 0 : index
    %4 = vector.load %arg5[%c0_7, %c0_8] : memref<1x96xf32, #tpu.memory_space<vmem>>, vector<1x96xf32>
    %c0_9 = arith.constant 0 : index
    %c0_10 = arith.constant 0 : index
    %c0_11 = arith.constant 0 : index
    %5 = vector.load %arg2[%c0_9, %c0_10, %c0_11] : memref<2x32x32xf32, #tpu.memory_space<vmem>>, vector<1x32x32xf32>
    %6 = vector.shape_cast %5 : vector<1x32x32xf32> to vector<32x32xf32>
    %7 = tpu.concatenate %1, %6 in 1 : vector<32x4xf32>, vector<32x32xf32> -> vector<32x36xf32>
    %cst = arith.constant dense<0.000000e+00> : vector<32x36xf32>
    %8 = tpu.matmul %0, %7, %cst {dimension_numbers = #tpu.dot_dimension_numbers<[1], [0], [0], [1], [0, 0, 1, 1], [], []>} : vector<32x32xf32>, vector<32x36xf32>, vector<32x36xf32> -> vector<32x36xf32>
    %cst_12 = arith.constant dense<0.000000e+00> : vector<32x96xf32>
    %9 = tpu.matmul %8, %2, %cst_12 {dimension_numbers = #tpu.dot_dimension_numbers<[1], [0], [0], [1], [0, 0, 1, 1], [], []>} : vector<32x36xf32>, vector<36x96xf32>, vector<32x96xf32> -> vector<32x96xf32>
    %10 = vector.broadcast %4 : vector<1x96xf32> to vector<32x96xf32>
    %11 = arith.addf %9, %10 : vector<32x96xf32>
    %12 = vector.extract_strided_slice %11 {offsets = [0, 0], sizes = [32, 32], strides = [1, 1]} : vector<32x96xf32> to vector<32x32xf32>
    %13 = arith.negf %12 : vector<32x32xf32>
    %14 = math.exp %13 : vector<32x32xf32>
    %cst_13 = arith.constant 1.000000e+00 : f32
    %15 = vector.broadcast %cst_13 : f32 to vector<32x32xf32>
    %16 = arith.addf %15, %14 : vector<32x32xf32>
    %17 = arith.divf %15, %16 : vector<32x32xf32>
    %18 = vector.extract_strided_slice %11 {offsets = [0, 32], sizes = [32, 32], strides = [1, 1]} : vector<32x96xf32> to vector<32x32xf32>
    %19 = arith.negf %18 : vector<32x32xf32>
    %20 = math.exp %19 : vector<32x32xf32>
    %cst_14 = arith.constant 1.000000e+00 : f32
    %21 = vector.broadcast %cst_14 : f32 to vector<32x32xf32>
    %22 = arith.addf %21, %20 : vector<32x32xf32>
    %23 = arith.divf %21, %22 : vector<32x32xf32>
    %24 = arith.mulf %23, %6 : vector<32x32xf32>
    %cst_15 = arith.constant dense<0.000000e+00> : vector<32x32xf32>
    %25 = tpu.matmul %0, %24, %cst_15 {dimension_numbers = #tpu.dot_dimension_numbers<[1], [0], [0], [1], [0, 0, 1, 1], [], []>} : vector<32x32xf32>, vector<32x32xf32>, vector<32x32xf32> -> vector<32x32xf32>
    %26 = vector.extract_strided_slice %11 {offsets = [0, 64], sizes = [32, 32], strides = [1, 1]} : vector<32x96xf32> to vector<32x32xf32>
    %cst_16 = arith.constant dense<0.000000e+00> : vector<32x32xf32>
    %27 = tpu.matmul %25, %3, %cst_16 {dimension_numbers = #tpu.dot_dimension_numbers<[1], [0], [0], [1], [0, 0, 1, 1], [], []>} : vector<32x32xf32>, vector<32x32xf32>, vector<32x32xf32> -> vector<32x32xf32>
    %28 = arith.addf %26, %27 : vector<32x32xf32>
    %29 = math.tanh %28 : vector<32x32xf32>
    %30 = arith.mulf %17, %6 : vector<32x32xf32>
    %cst_17 = arith.constant 1.000000e+00 : f32
    %31 = vector.broadcast %cst_17 : f32 to vector<32x32xf32>
    %32 = arith.subf %31, %17 : vector<32x32xf32>
    %33 = arith.mulf %32, %29 : vector<32x32xf32>
    %34 = arith.addf %30, %33 : vector<32x32xf32>
    %c0_18 = arith.constant 0 : index
    %c0_19 = arith.constant 0 : index
    %c0_20 = arith.constant 0 : index
    %35 = vector.load %arg12[%c0_18, %c0_19, %c0_20] : memref<2x32x32xf32, #tpu.memory_space<vmem>>, vector<1x32x32xf32>
    %36 = vector.shape_cast %35 : vector<1x32x32xf32> to vector<32x32xf32>
    %37 = vector.shape_cast %34 : vector<32x32xf32> to vector<1x32x32xf32>
    tpu.vector_store %arg12[%c0_18, %c0_19, %c0_20], %37 {strides = array<i32>} : memref<2x32x32xf32, #tpu.memory_space<vmem>>, vector<1x32x32xf32>,
    %c0_21 = arith.constant 0 : index
    %c0_22 = arith.constant 0 : index
    %38 = vector.load %arg6[%c0_21, %c0_22] : memref<64x96xf32, #tpu.memory_space<vmem>>, vector<64x96xf32>
    %c0_23 = arith.constant 0 : index
    %c0_24 = arith.constant 0 : index
    %39 = vector.load %arg7[%c0_23, %c0_24] : memref<32x32xf32, #tpu.memory_space<vmem>>, vector<32x32xf32>
    %c0_25 = arith.constant 0 : index
    %c0_26 = arith.constant 0 : index
    %40 = vector.load %arg8[%c0_25, %c0_26] : memref<1x96xf32, #tpu.memory_space<vmem>>, vector<1x96xf32>
    %c1 = arith.constant 1 : index
    %c0_27 = arith.constant 0 : index
    %c0_28 = arith.constant 0 : index
    %41 = vector.load %arg2[%c1, %c0_27, %c0_28] : memref<2x32x32xf32, #tpu.memory_space<vmem>>, vector<1x32x32xf32>
    %42 = vector.shape_cast %41 : vector<1x32x32xf32> to vector<32x32xf32>
    %43 = tpu.concatenate %34, %42 in 1 : vector<32x32xf32>, vector<32x32xf32> -> vector<32x64xf32>
    %cst_29 = arith.constant dense<0.000000e+00> : vector<32x64xf32>
    %44 = tpu.matmul %0, %43, %cst_29 {dimension_numbers = #tpu.dot_dimension_numbers<[1], [0], [0], [1], [0, 0, 1, 1], [], []>} : vector<32x32xf32>, vector<32x64xf32>, vector<32x64xf32> -> vector<32x64xf32>
    %cst_30 = arith.constant dense<0.000000e+00> : vector<32x96xf32>
    %45 = tpu.matmul %44, %38, %cst_30 {dimension_numbers = #tpu.dot_dimension_numbers<[1], [0], [0], [1], [0, 0, 1, 1], [], []>} : vector<32x64xf32>, vector<64x96xf32>, vector<32x96xf32> -> vector<32x96xf32>
    %46 = vector.broadcast %40 : vector<1x96xf32> to vector<32x96xf32>
    %47 = arith.addf %45, %46 : vector<32x96xf32>
    %48 = vector.extract_strided_slice %47 {offsets = [0, 0], sizes = [32, 32], strides = [1, 1]} : vector<32x96xf32> to vector<32x32xf32>
    %49 = arith.negf %48 : vector<32x32xf32>
    %50 = math.exp %49 : vector<32x32xf32>
    %cst_31 = arith.constant 1.000000e+00 : f32
    %51 = vector.broadcast %cst_31 : f32 to vector<32x32xf32>
    %52 = arith.addf %51, %50 : vector<32x32xf32>
    %53 = arith.divf %51, %52 : vector<32x32xf32>
    %54 = vector.extract_strided_slice %47 {offsets = [0, 32], sizes = [32, 32], strides = [1, 1]} : vector<32x96xf32> to vector<32x32xf32>
    %55 = arith.negf %54 : vector<32x32xf32>
    %56 = math.exp %55 : vector<32x32xf32>
    %cst_32 = arith.constant 1.000000e+00 : f32
    %57 = vector.broadcast %cst_32 : f32 to vector<32x32xf32>
    %58 = arith.addf %57, %56 : vector<32x32xf32>
    %59 = arith.divf %57, %58 : vector<32x32xf32>
    %60 = arith.mulf %59, %42 : vector<32x32xf32>
    %cst_33 = arith.constant dense<0.000000e+00> : vector<32x32xf32>
    %61 = tpu.matmul %0, %60, %cst_33 {dimension_numbers = #tpu.dot_dimension_numbers<[1], [0], [0], [1], [0, 0, 1, 1], [], []>} : vector<32x32xf32>, vector<32x32xf32>, vector<32x32xf32> -> vector<32x32xf32>
    %62 = vector.extract_strided_slice %47 {offsets = [0, 64], sizes = [32, 32], strides = [1, 1]} : vector<32x96xf32> to vector<32x32xf32>
    %cst_34 = arith.constant dense<0.000000e+00> : vector<32x32xf32>
    %63 = tpu.matmul %61, %39, %cst_34 {dimension_numbers = #tpu.dot_dimension_numbers<[1], [0], [0], [1], [0, 0, 1, 1], [], []>} : vector<32x32xf32>, vector<32x32xf32>, vector<32x32xf32> -> vector<32x32xf32>
    %64 = arith.addf %62, %63 : vector<32x32xf32>
    %65 = math.tanh %64 : vector<32x32xf32>
    %66 = arith.mulf %53, %42 : vector<32x32xf32>
    %cst_35 = arith.constant 1.000000e+00 : f32
    %67 = vector.broadcast %cst_35 : f32 to vector<32x32xf32>
    %68 = arith.subf %67, %53 : vector<32x32xf32>
    %69 = arith.mulf %68, %65 : vector<32x32xf32>
    %70 = arith.addf %66, %69 : vector<32x32xf32>
    %c1_36 = arith.constant 1 : index
    %c0_37 = arith.constant 0 : index
    %c0_38 = arith.constant 0 : index
    %71 = vector.load %arg12[%c1_36, %c0_37, %c0_38] : memref<2x32x32xf32, #tpu.memory_space<vmem>>, vector<1x32x32xf32>
    %72 = vector.shape_cast %71 : vector<1x32x32xf32> to vector<32x32xf32>
    %73 = vector.shape_cast %70 : vector<32x32xf32> to vector<1x32x32xf32>
    tpu.vector_store %arg12[%c1_36, %c0_37, %c0_38], %73 {strides = array<i32>} : memref<2x32x32xf32, #tpu.memory_space<vmem>>, vector<1x32x32xf32>,
    %c0_39 = arith.constant 0 : index
    %c0_40 = arith.constant 0 : index
    %74 = vector.load %arg9[%c0_39, %c0_40] : memref<32x4xf32, #tpu.memory_space<vmem>>, vector<32x4xf32>
    %cst_41 = arith.constant dense<0.000000e+00> : vector<32x4xf32>
    %75 = tpu.matmul %70, %74, %cst_41 {dimension_numbers = #tpu.dot_dimension_numbers<[1], [0], [0], [1], [0, 0, 1, 1], [], []>} : vector<32x32xf32>, vector<32x4xf32>, vector<32x4xf32> -> vector<32x4xf32>
    %c0_42 = arith.constant 0 : index
    %c0_43 = arith.constant 0 : index
    %76 = vector.load %arg10[%c0_42, %c0_43] : memref<1x4xf32, #tpu.memory_space<vmem>>, vector<1x4xf32>
    %77 = vector.broadcast %76 : vector<1x4xf32> to vector<32x4xf32>
    %78 = arith.addf %75, %77 : vector<32x4xf32>
    %c0_44 = arith.constant 0 : index
    %c0_45 = arith.constant 0 : index
    %79 = vector.load %arg11[%c0_44, %c0_45] : memref<32x4xf32, #tpu.memory_space<vmem>>, vector<32x4xf32>
    tpu.vector_store %arg11[%c0_44, %c0_45], %78 {strides = array<i32>} : memref<32x4xf32, #tpu.memory_space<vmem>>, vector<32x4xf32>,
    return
  }
}

</mosaic_0001>

<bundles_post_ra>
// kernel: decoder_forward.1
= control target key start
LH: loop header
LB: loop body
LE: loop exit
PB: predicated region body
PF: predicated region fallthrough
CT: control target
= control target key end

     0   :  { %s962_s25 = smov 4   ;;  %vm78_vm0 = vcmask 31744   ;;  %vm83_vm1 = vcmask 261120   ;;  %vm141_vm2 = vcmask 1043456   ;;  %s963_s16 = smov 32   ;;  %vm128_vm3 = vcmask 293888   ;;  %s1429_s2 = inlined_call_operand.vmem [shape: f32[2,32,32], index: 2, kind: input, shape index: {}, may-alias: {2,12}]   ;;  %s1430_s1 = inlined_call_operand.vmem [shape: f32[32,4], index: 1, kind: input, shape index: {}]   ;;  %s1431_s0 = inlined_call_operand.vmem [shape: f32[32,32], index: 0, kind: input, shape index: {}]   ;;  %s1432_s3 = inlined_call_operand.vmem [shape: f32[36,96], index: 3, kind: input, shape index: {}]   ;;  %s1433_s5 = inlined_call_operand.vmem [shape: f32[1,96], index: 5, kind: input, shape index: {}]   ;;  %s1434_s4 = inlined_call_operand.vmem [shape: f32[32,32], index: 4, kind: input, shape index: {}]   ;;  %s1435_s12 = inlined_call_operand.vmem [shape: f32[2,32,32], index: 12, kind: output, shape index: {1}, may-alias: {2,12}]   ;;  %s1436_s6 = inlined_call_operand.vmem [shape: f32[64,96], index: 6, kind: input, shape index: {}]   ;;  %s1437_s8 = inlined_call_operand.vmem [shape: f32[1,96], index: 8, kind: input, shape index: {}]   ;;  %s1438_s7 = inlined_call_operand.vmem [shape: f32[32,32], index: 7, kind: input, shape index: {}]   ;;  %s1439_s9 = inlined_call_operand.vmem [shape: f32[32,4], index: 9, kind: input, shape index: {}]   ;;  %s1440_s10 = inlined_call_operand.vmem [shape: f32[1,4], index: 10, kind: input, shape index: {}]   ;;  %s1441_s11 = inlined_call_operand.vmem [shape: f32[32,4], index: 11, kind: output, shape index: {0}]  }
   0x1   :  { %v1034_v0 = vld [vmem:[%s1429_s2 + $0x10] sm:$0xff]  ;;  %v1039_v1 = vld [vmem:[%s1429_s2 + $0x18] sm:$0xff]  ;;  %v1046_v3 = vld [vmem:[%s1429_s2] sm:$0xff]  ;;  %s965_s27 = smov 64  }
   0x2   :  { %v881_v2 = vpack.i.bf16 %v1034_v0, %v1039_v1  ;;  %v1051_v4 = vld [vmem:[%s1429_s2 + $0x8] sm:$0xff]  ;;  %v47_v7 = vld [vmem:[%s1430_s1 + $0x18] sm:$0xff]  ;;  %v46_v10 = vld [vmem:[%s1430_s1 + $0x10] sm:$0xff]  ;;  %256 = vrot.lane.b32.xlu1 %v1039_v1, %s963_s16 }
   0x3   :  { %v886_v5 = vpack.i.bf16 %v1046_v3, %v1051_v4  ;;  %v45_v14 = vld [vmem:[%s1430_s1 + $0x8] sm:$0xff]  ;;  %v44_v17 = vld [vmem:[%s1430_s1] sm:$0xff]  ;;  %v1084_v22 = vld [vmem:[%s1431_s0 + $0x10] sm:$0xff]  ;;  %252 = vrot.lane.b32.xlu2 %v1051_v4, %s963_s16 }
   0x4   :  { %882 = vrot.lane.b32.xlu0 %v881_v2, %s962_s25  ;;  %v1074_v20 = vld [vmem:[%s1431_s0] sm:$0xff]  ;;  %v1079_v21 = vld [vmem:[%s1431_s0 + $0x8] sm:$0xff]  ;;  %v1089_v23 = vld [vmem:[%s1431_s0 + $0x18] sm:$0xff] }
   0x5   :  { %v52_v24 = vld [vmem:[%s1432_s3 + $0x20] sm:$0xf]  ;;  %v51_v25 = vld [vmem:[%s1432_s3 + $0x18] sm:$0xff]  ;;  %v50_v26 = vld [vmem:[%s1432_s3 + $0x10] sm:$0xff] }
   0x6   :  { %v49_v27 = vld [vmem:[%s1432_s3 + $0x8] sm:$0xff]  ;;  %v48_v28 = vld [vmem:[%s1432_s3] sm:$0xff]  ;;  %s964_s3 = smov 96  }
   0x7   :  { %v911_v33 = vld [vmem:[%s1433_s5] ss:$0 sm:$0xff] }
   0xa   :  { %254 = vrot.lane.b32.xlu1 %v1034_v0, %s963_s16 }
   0xb   :  { %250 = vrot.lane.b32.xlu2 %v1046_v3, %s963_s16 }
   0xc   :  { %887 = vrot.lane.b32.xlu0 %v886_v5, %s962_s25 }
  0x5d   :  { %v253_v53 = vpop.permute.xlu2 %252 }
  0x76   :  { %v883_v6 = vpop.permute.xlu0 %882 }
  0x77   :  { %v885_v8 = vunpack.i.h.bf16 %v883_v6  ;;  %v884_v9 = vunpack.i.l.bf16 %v883_v6 }
  0x79   :  { %v82_v11 = vsel %vm78_vm0, %v47_v7, %v884_v9  ;;  %v81_v12 = vsel %vm78_vm0, %v46_v10, %v885_v8 }
  0x7a   :  { %108 = vmatpush.msra.mxu0 %v82_v11  ;;  %865 = vmatpush.msra.mxu1 %v82_v11 }
  0x7b   :  { %866 = vmatpush.msra.mxu2 %v82_v11  ;;  %867 = vmatpush.msra.mxu3 %v82_v11 }
  0x7c   :  { %109 = vmatpush.msra.mxu0 %v81_v12  ;;  %868 = vmatpush.msra.mxu1 %v81_v12 }
  0x7d   :  { %869 = vmatpush.msra.mxu2 %v81_v12  ;;  %870 = vmatpush.msra.mxu3 %v81_v12 }
  0x7e   :  { %v888_v13 = vpop.permute.xlu0 %887 }
  0x7f   :  { %v890_v15 = vunpack.i.h.bf16 %v888_v13  ;;  %v889_v16 = vunpack.i.l.bf16 %v888_v13 }
  0x81   :  { %v80_v18 = vsel %vm78_vm0, %v45_v14, %v889_v16  ;;  %v79_v19 = vsel %vm78_vm0, %v44_v17, %v890_v15  ;;  %v251_v14 = vpop.permute.xlu2 %250 }
  0x82   :  { %110 = vmatpush.msra.mxu0 %v80_v18  ;;  %871 = vmatpush.msra.mxu1 %v80_v18 }
  0x83   :  { %872 = vmatpush.msra.mxu2 %v80_v18  ;;  %873 = vmatpush.msra.mxu3 %v80_v18 }
  0x84   :  { %111 = vmatpush.msra.mxu0 %v79_v19  ;;  %874 = vmatpush.msra.mxu1 %v79_v19 }
  0x85   :  { %875 = vmatpush.msra.mxu2 %v79_v19  ;;  %876 = vmatpush.msra.mxu3 %v79_v19 }
  0x86   :  { %812 = vmatmul.msk.f32.vlgmr.msra.gmra.mxu0 %vm83_vm1, %v1074_v20  ;;  %813 = vmatmul.msk.f32.vlgmr.msra.gmra.mxu1 %vm83_vm1, %v1079_v21 }
  0x87   :  { %814 = vmatmul.msk.f32.vlgmr.msra.gmra.mxu2 %vm83_vm1, %v1084_v22  ;;  %815 = vmatmul.msk.f32.vlgmr.msra.gmra.mxu3 %vm83_vm1, %v1089_v23 }
  0x88   :  { %816 = vmatpush.msk.msrb.mxu1 %vm141_vm2, %v52_v24 }
  0x8a   :  { %157 = vmatpush.msrb.mxu1 %v51_v25 }
  0x8c   :  { %158 = vmatpush.msrb.mxu1 %v50_v26 }
  0x8e   :  { %159 = vmatpush.msrb.mxu1 %v49_v27 }
  0x90   :  { %160 = vmatpush.msrb.mxu1 %v48_v28  ;;  %v257_v28 = vpop.permute.xlu1 %256 }
 0x103   :  { %v113_v29 = vpop.f32.mrf.mxu0  ;;  %v116_v30 = vpop.f32.mrf.mxu1 }
 0x104   :  { %817 = vmatmul.msk.f32.vlgmr.msrb.gmra.mxu1 %vm128_vm3, %v113_v29 }
 0x10a   :  { %v119_v31 = vpop.f32.mrf.mxu2  ;;  %v122_v32 = vpop.f32.mrf.mxu3 }
 0x10c   :  { %818 = vmatmul.msk.f32.gmra.mxu1 %vm128_vm3, %v116_v30 }
 0x114   :  { %819 = vmatmul.msk.f32.gmra.mxu1 %vm128_vm3, %v119_v31 }
 0x11c   :  { %820 = vmatmul.msk.f32.gmra.mxu1 %vm128_vm3, %v122_v32 }
 0x181   :  { %v162_v34 = vpop.f32.mrf.mxu1 }
 0x182   :  { %v1125_v35 = vadd.f32 %v911_v33, %v162_v34 }
 0x184   :  { %v821_v36 = vmul.f32 -1.442695, %v1125_v35 }
 0x186   :  { %914 = vpow2.f32 %v821_v36 }
 0x189   :  { %v165_v37 = vpop.f32.mrf.mxu1 }
 0x18a   :  { %v1128_v38 = vadd.f32 %v911_v33, %v165_v37 }
 0x18c   :  { %v915_v39 = vpop.eup %914  ;;  %v822_v40 = vmul.f32 -1.442695, %v1128_v38 }
 0x18d   :  { %v186_v41 = vadd.f32 1.0, %v915_v39 }
 0x18e   :  { %916 = vpow2.f32 %v822_v40 }
 0x18f   :  { %918 = vrcp.f32 %v186_v41  ;;  %v201_v60 = vand.u32 2147483648, %v186_v41  ;;  %vm195_vm5 = vweird.f32 %v186_v41  ;;  %v199_v62 = vand.u32 2147483647, %v186_v41 }
 0x191   :  { %v168_v42 = vpop.f32.mrf.mxu1  ;;  %v202_v8 = vor.u32 1.1754944e-38, %v201_v60  ;;  %vm200_vm9 = vcmp.eq.f32.partialorder %v199_v62, 8.507059e+37  ;;  %v53_v62 = vld [vmem:[%s1434_s4] sm:$0xff] }
 0x192   :  { %v1131_v43 = vadd.f32 %v911_v33, %v168_v42 }
 0x194   :  { %v917_v44 = vpop.eup %916  ;;  %v823_v45 = vmul.f32 -1.442695, %v1131_v43 }
 0x195   :  { %v919_v46 = vpop.eup %918  ;;  %v187_v47 = vadd.f32 1.0, %v917_v44 }
 0x196   :  { %920 = vpow2.f32 %v823_v45  ;;  %v191_v48 = vmul.f32 %v919_v46, %v186_v41  ;;  %vm196_vm4 = vweird.f32 %v919_v46  ;;  %v255_v45 = vpop.permute.xlu1 %254 }
 0x197   :  { %922 = vrcp.f32 %v187_v47  ;;  %v216_v63 = vand.u32 2147483648, %v187_v47  ;;  %vm1137_vm6 = vmor %vm195_vm5, %vm196_vm4  ;;  %v214_v6 = vand.u32 2147483647, %v187_v47  ;;  %vm210_vm8 = vweird.f32 %v187_v47 }
 0x198   :  { %v192_v49 = vsub.f32 1.0, %v191_v48 }
 0x199   :  { %v171_v50 = vpop.f32.mrf.mxu1  ;;  %v217_v12 = vor.u32 1.1754944e-38, %v216_v63  ;;  %vm215_vm11 = vcmp.eq.f32.partialorder %v214_v6, 8.507059e+37 }
 0x19a   :  { %v1134_v51 = vadd.f32 %v911_v33, %v171_v50  ;;  %v193_v52 = vmul.f32 %v919_v46, %v192_v49 }
 0x19c   :  { %v921_v54 = vpop.eup %920  ;;  %v824_v55 = vmul.f32 -1.442695, %v1134_v51  ;;  %v194_v59 = vadd.f32 %v919_v46, %v193_v52 }
 0x19d   :  { %v923_v56 = vpop.eup %922  ;;  %v188_v57 = vadd.f32 1.0, %v921_v54 }
 0x19e   :  { %v206_v58 = vmul.f32 %v923_v56, %v187_v47  ;;  %924 = vpow2.f32 %v824_v55  ;;  %vm211_vm7 = vweird.f32 %v923_v56  ;;  %v198_v7 = vsel %vm1137_vm6, %v919_v46, %v194_v59  ;;  %v54_v59 = vld [vmem:[%s1434_s4 + $0x8] sm:$0xff] }
 0x19f   :  { %926 = vrcp.f32 %v188_v57  ;;  %vm212_vm10 = vmor %vm210_vm8, %vm211_vm7  ;;  %v1143_v15 = vsel %vm200_vm9, %v202_v8, %v198_v7  ;;  %v231_v32 = vand.u32 2147483648, %v188_v57  ;;  %vm225_vm13 = vweird.f32 %v188_v57 }
 0x1a0   :  { %v207_v61 = vsub.f32 1.0, %v206_v58  ;;  %v262_v24 = vmul.f32 %v251_v14, %v1143_v15  ;;  %v229_v34 = vand.u32 2147483647, %v188_v57  ;;  %vm482_vm6 = vcmask 523264  }
 0x1a1   :  { %v232_v41 = vor.u32 1.1754944e-38, %v231_v32 }
 0x1a2   :  { %v208_v5 = vmul.f32 %v923_v56, %v207_v61  ;;  %vm230_vm3 = vcmp.eq.f32.partialorder %v229_v34, 8.507059e+37 }
 0x1a4   :  { %v925_v9 = vpop.eup %924  ;;  %v209_v10 = vadd.f32 %v923_v56, %v208_v5 }
 0x1a5   :  { %v927_v11 = vpop.eup %926  ;;  %v189_v13 = vadd.f32 1.0, %v925_v9 }
 0x1a6   :  { %v213_v16 = vsel %vm212_vm10, %v923_v56, %v209_v10  ;;  %v221_v17 = vmul.f32 %v927_v11, %v188_v57  ;;  %vm226_vm12 = vweird.f32 %v927_v11  ;;  %v56_v56 = vld [vmem:[%s1434_s4 + $0x18] sm:$0xff]  ;;  %v55_v57 = vld [vmem:[%s1434_s4 + $0x10] sm:$0xff] }
 0x1a7   :  { %v1145_v18 = vsel %vm215_vm11, %v217_v12, %v213_v16  ;;  %928 = vrcp.f32 %v189_v13  ;;  %v246_v36 = vand.u32 2147483648, %v189_v13  ;;  %vm227_vm14 = vmor %vm225_vm13, %vm226_vm12  ;;  %v244_v39 = vand.u32 2147483647, %v189_v13  ;;  %335 = vmatpush.msrb.mxu3 %v56_v56  ;;  %v416_v56 = vld [vmem:[%s1436_s6 + $0x20] sm:$0xff] }
 0x1a8   :  { %v263_v19 = vmul.f32 %v253_v53, %v1145_v18  ;;  %v222_v25 = vsub.f32 1.0, %v221_v17  ;;  %vm240_vm2 = vweird.f32 %v189_v13 }
 0x1a9   :  { %v247_v44 = vor.u32 1.1754944e-38, %v246_v36  ;;  %vm245_vm5 = vcmp.eq.f32.partialorder %v244_v39, 8.507059e+37  ;;  %336 = vmatpush.msrb.mxu3 %v55_v57 }
 0x1aa   :  { %v896_v26 = vpack.i.bf16 %v262_v24, %v263_v19  ;;  %v223_v27 = vmul.f32 %v927_v11, %v222_v25  ;;  %v1199_v25 = vld [vmem:[%s1429_s2 + $0x28] sm:$0xff] }
 0x1ab   :  { %337 = vmatpush.msrb.mxu3 %v54_v59  ;;  %v415_v59 = vld [vmem:[%s1436_s6 + $0x18] sm:$0xff] }
 0x1ac   :  { %897 = vrot.lane.b32.xlu1 %v896_v26, %s964_s3  ;;  %v224_v31 = vadd.f32 %v927_v11, %v223_v27 }
 0x1ad   :  { %v929_v29 = vpop.eup %928  ;;  %338 = vmatpush.msrb.mxu3 %v53_v62  ;;  %v412_v62 = vld [vmem:[%s1436_s6] sm:$0xff] }
 0x1ae   :  { %v236_v30 = vmul.f32 %v929_v29, %v189_v13  ;;  %vm241_vm15 = vweird.f32 %v929_v29  ;;  %v228_v40 = vsel %vm227_vm14, %v927_v11, %v224_v31  ;;  %v1188_v11 = vld [vmem:[%s1429_s2 + $0x38] sm:$0xff]  ;;  %v377_v31 = vmul.f32 %v1145_v18, %v1051_v4 }
 0x1af   :  { %vm242_vm4 = vmor %vm240_vm2, %vm241_vm15  ;;  %v1150_v46 = vsel %vm230_vm3, %v232_v41, %v228_v40 }
 0x1b0   :  { %v237_v33 = vsub.f32 1.0, %v236_v30  ;;  %v264_v50 = vmul.f32 %v255_v45, %v1150_v46 }
 0x1b2   :  { %v238_v37 = vmul.f32 %v929_v29, %v237_v33 }
 0x1b4   :  { %v239_v42 = vadd.f32 %v929_v29, %v238_v37 }
 0x1b6   :  { %v243_v47 = vsel %vm242_vm4, %v929_v29, %v239_v42  ;;  %v381_v29 = vsub.f32 1.0, %v1145_v18  ;;  %v380_v18 = vsub.f32 1.0, %v1143_v15 }
 0x1b7   :  { %v1152_v48 = vsel %vm245_vm5, %v247_v44, %v243_v47  ;;  %v376_v44 = vmul.f32 %v1143_v15, %v1046_v3  ;;  %v419_v3 = vld [vmem:[%s1436_s6 + $0x38] sm:$0xff]  ;;  %v418_v15 = vld [vmem:[%s1436_s6 + $0x30] sm:$0xff] }
 0x1b8   :  { %v265_v49 = vmul.f32 %v257_v28, %v1152_v48  ;;  %v383_v36 = vsub.f32 1.0, %v1152_v48  ;;  %v379_v39 = vmul.f32 %v1152_v48, %v1039_v1  ;;  %v382_v1 = vsub.f32 1.0, %v1150_v46 }
 0x1ba   :  { %v891_v52 = vpack.i.bf16 %v264_v50, %v265_v49  ;;  %v378_v49 = vmul.f32 %v1150_v46, %v1034_v0  ;;  %v417_v46 = vld [vmem:[%s1436_s6 + $0x28] sm:$0xff] }
 0x1bc   :  { %892 = vrot.lane.b32.xlu0 %v891_v52, %s964_s3 }
 0x21e   :  { %v898_v55 = vpop.permute.xlu1 %897 }
 0x21f   :  { %v899_v60 = vunpack.i.l.bf16 %v898_v55  ;;  %v900_v61 = vunpack.i.h.bf16 %v898_v55 }
 0x22e   :  { %v893_v53 = vpop.permute.xlu0 %892 }
 0x22f   :  { %v894_v54 = vunpack.i.l.bf16 %v893_v53  ;;  %v895_v58 = vunpack.i.h.bf16 %v893_v53 }
 0x231   :  { %294 = vmatpush.msrb.mxu2 %v894_v54 }
 0x233   :  { %295 = vmatpush.msrb.mxu2 %v895_v58 }
 0x235   :  { %296 = vmatpush.msrb.mxu2 %v899_v60  ;;  %v414_v60 = vld [vmem:[%s1436_s6 + $0x10] sm:$0xff] }
 0x237   :  { %297 = vmatpush.msrb.mxu2 %v900_v61  ;;  %v413_v61 = vld [vmem:[%s1436_s6 + $0x8] sm:$0xff] }
 0x238   :  { %825 = vmatmul.msk.f32.vlgmr.msrb.gmra.mxu2 %vm83_vm1, %v1074_v20 }
 0x239   :  { %503 = vmatpush.msra.mxu2 %v419_v3 }
 0x23b   :  { %504 = vmatpush.msra.mxu2 %v418_v15 }
 0x23d   :  { %505 = vmatpush.msra.mxu2 %v417_v46 }
 0x23f   :  { %506 = vmatpush.msra.mxu2 %v416_v56 }
 0x240   :  { %826 = vmatmul.msk.f32.gmra.mxu2 %vm83_vm1, %v1079_v21 }
 0x241   :  { %507 = vmatpush.msra.mxu2 %v415_v59 }
 0x243   :  { %508 = vmatpush.msra.mxu2 %v414_v60 }
 0x245   :  { %509 = vmatpush.msra.mxu2 %v413_v61 }
 0x247   :  { %510 = vmatpush.msra.mxu2 %v412_v62 }
 0x248   :  { %827 = vmatmul.msk.f32.gmra.mxu2 %vm83_vm1, %v1084_v22 }
 0x250   :  { %828 = vmatmul.msk.f32.gmra.mxu2 %vm83_vm1, %v1089_v23 }
 0x2bb   :  { %v299_v63 = vpop.f32.mrf.mxu2 }
 0x2bc   :  { %829 = vmatmul.msk.f32.vlgmr.msrb.gmra.mxu3 %vm83_vm1, %v299_v63 }
 0x2c3   :  { %v302_v2 = vpop.f32.mrf.mxu2 }
 0x2c4   :  { %830 = vmatmul.msk.f32.gmra.mxu3 %vm83_vm1, %v302_v2 }
 0x2cb   :  { %v305_v5 = vpop.f32.mrf.mxu2 }
 0x2cc   :  { %831 = vmatmul.msk.f32.gmra.mxu3 %vm83_vm1, %v305_v5 }
 0x2d3   :  { %v308_v6 = vpop.f32.mrf.mxu2 }
 0x2d4   :  { %832 = vmatmul.msk.f32.gmra.mxu3 %vm83_vm1, %v308_v6 }
 0x33f   :  { %v340_v7 = vpop.f32.mrf.mxu3 }
 0x347   :  { %v343_v8 = vpop.f32.mrf.mxu3 }
 0x348   :  { %358 = vrot.lane.b32.xlu1 %v343_v8, %s965_s27 }
 0x34f   :  { %v346_v9 = vpop.f32.mrf.mxu3 }
 0x350   :  { %360 = vrot.lane.b32.xlu0 %v346_v9, %s965_s27 }
 0x357   :  { %v349_v10 = vpop.f32.mrf.mxu3 }
 0x358   :  { %362 = vrot.lane.b32.xlu2 %v349_v10, %s965_s27  ;;  %440 = vrot.lane.b32.xlu0 %v1188_v11, %s963_s16 }
 0x360   :  { %356 = vrot.lane.b32.xlu2 %v340_v7, %s965_s27  ;;  %v912_v7 = vld [vmem:[%s1437_s8] ss:$0 sm:$0xff] }
 0x3b2   :  { %v363_v12 = vpop.permute.xlu2 %362 }
 0x3b3   :  { %v371_v13 = vadd.f32 %v363_v12, %v1134_v51 }
 0x3b5   :  { %930 = vtanh.f32 %v371_v13 }
 0x3ba   :  { %v359_v14 = vpop.permute.xlu1 %358  ;;  %v357_v16 = vpop.permute.xlu2 %356 }
 0x3bb   :  { %v931_v17 = vpop.eup %930  ;;  %v369_v19 = vadd.f32 %v359_v14, %v1128_v38  ;;  %v368_v24 = vadd.f32 %v357_v16, %v1125_v35  ;;  %v1209_v35 = vld [vmem:[%s1429_s2 + $0x30] sm:$0xff] }
 0x3bc   :  { %394 = vrot.lane.b32.xlu0 %v931_v17, %s965_s27 }
 0x3bd   :  { %932 = vtanh.f32 %v369_v19 }
 0x3be   :  { %934 = vtanh.f32 %v368_v24 }
 0x3c2   :  { %v361_v26 = vpop.permute.xlu0 %360 }
 0x3c3   :  { %v933_v27 = vpop.eup %932  ;;  %v370_v51 = vadd.f32 %v361_v26, %v1131_v43  ;;  %v1217_v43 = vld [vmem:[%s1429_s2 + $0x20] sm:$0xff] }
 0x3c4   :  { %v935_v28 = vpop.eup %934  ;;  %390 = vrot.lane.b32.xlu2 %v933_v27, %s965_s27  ;;  %436 = vrot.lane.b32.xlu0 %v1199_v25, %s963_s16 }
 0x3c5   :  { %936 = vtanh.f32 %v370_v51  ;;  %388 = vrot.lane.b32.xlu1 %v935_v28, %s965_s27 }
 0x3ca   :  { %v1228_v34 = vpop.permute.xlu0 %440 }
 0x3cb   :  { %v937_v38 = vpop.eup %936 }
 0x3cc   :  { %438 = vrot.lane.b32.xlu2 %v1209_v35, %s963_s16 }
 0x3cd   :  { %392 = vrot.lane.b32.xlu1 %v937_v38, %s965_s27 }
 0x3d5   :  { %434 = vrot.lane.b32.xlu1 %v1217_v43, %s963_s16 }
 0x41e   :  { %v391_v30 = vpop.permute.xlu2 %390 }
 0x41f   :  { %v401_v32 = vmul.f32 %v391_v30, %v381_v29 }
 0x421   :  { %v405_v33 = vadd.f32 %v401_v32, %v377_v31 }
 0x423   :  { %409 = vst.msk [vmem:[%s1435_s12 + $0x8] sm:$0xff] %vm83_vm1, %v405_v33 }
 0x426   :  { %v1249_v52 = vpop.permute.xlu2 %438 }
 0x42e   :  { %v395_v37 = vpop.permute.xlu0 %394 }
 0x42f   :  { %v403_v40 = vmul.f32 %v395_v37, %v383_v36 }
 0x431   :  { %v407_v41 = vadd.f32 %v403_v40, %v379_v39 }
 0x433   :  { %411 = vst.msk [vmem:[%s1435_s12 + $0x18] sm:$0xff] %vm83_vm1, %v407_v41  ;;  %v449_v4 = vsel %vm83_vm1, %v407_v41, %v1228_v34 }
 0x434   :  { %462 = vmatpush.msrb.mxu0 %v449_v4 }
 0x436   :  { %v1257_v54 = vpop.permute.xlu0 %436 }
 0x437   :  { %v389_v42 = vpop.permute.xlu1 %388  ;;  %v447_v55 = vsel %vm83_vm1, %v405_v33, %v1257_v54 }
 0x438   :  { %v400_v45 = vmul.f32 %v389_v42, %v380_v18 }
 0x43a   :  { %v404_v47 = vadd.f32 %v400_v45, %v376_v44 }
 0x43c   :  { %408 = vst.msk [vmem:[%s1435_s12] sm:$0xff] %vm83_vm1, %v404_v47 }
 0x43f   :  { %v393_v48 = vpop.permute.xlu1 %392 }
 0x440   :  { %v402_v50 = vmul.f32 %v393_v48, %v382_v1 }
 0x442   :  { %v406_v53 = vadd.f32 %v402_v50, %v378_v49 }
 0x444   :  { %410 = vst.msk [vmem:[%s1435_s12 + $0x10] sm:$0xff] %vm83_vm1, %v406_v53  ;;  %v448_v0 = vsel %vm83_vm1, %v406_v53, %v1249_v52 }
 0x445   :  { %463 = vmatpush.msrb.mxu0 %v448_v0 }
 0x447   :  { %v1273_v57 = vpop.permute.xlu1 %434  ;;  %464 = vmatpush.msrb.mxu0 %v447_v55 }
 0x448   :  { %v446_v58 = vsel %vm83_vm1, %v404_v47, %v1273_v57 }
 0x449   :  { %465 = vmatpush.msrb.mxu0 %v446_v58 }
 0x44a   :  { %837 = vmatmul.msk.f32.vlgmr.msrb.gmra.mxu0 %vm83_vm1, %v1074_v20 }
 0x452   :  { %838 = vmatmul.msk.f32.gmra.mxu0 %vm83_vm1, %v1079_v21 }
 0x45a   :  { %839 = vmatmul.msk.f32.gmra.mxu0 %vm83_vm1, %v1084_v22 }
 0x462   :  { %840 = vmatmul.msk.f32.gmra.mxu0 %vm83_vm1, %v1089_v23 }
 0x4c7   :  { %v467_v63 = vpop.f32.mrf.mxu0 }
 0x4c8   :  { %841 = vmatmul.msk.f32.vlgmr.msra.gmra.mxu2 %vm482_vm6, %v467_v63 }
 0x4cf   :  { %v470_v2 = vpop.f32.mrf.mxu0 }
 0x4d0   :  { %842 = vmatmul.msk.f32.gmra.mxu2 %vm482_vm6, %v470_v2 }
 0x4d7   :  { %v473_v5 = vpop.f32.mrf.mxu0 }
 0x4d8   :  { %843 = vmatmul.msk.f32.gmra.mxu2 %vm482_vm6, %v473_v5 }
 0x4df   :  { %v476_v6 = vpop.f32.mrf.mxu0 }
 0x4e0   :  { %844 = vmatmul.msk.f32.gmra.mxu2 %vm482_vm6, %v476_v6 }
 0x54b   :  { %v512_v8 = vpop.f32.mrf.mxu2 }
 0x54c   :  { %v1300_v9 = vadd.f32 %v912_v7, %v512_v8 }
 0x54e   :  { %v845_v10 = vmul.f32 -1.442695, %v1300_v9 }
 0x550   :  { %938 = vpow2.f32 %v845_v10 }
 0x553   :  { %v515_v12 = vpop.f32.mrf.mxu2 }
 0x554   :  { %v1303_v13 = vadd.f32 %v912_v7, %v515_v12 }
 0x556   :  { %v939_v14 = vpop.eup %938  ;;  %v846_v16 = vmul.f32 -1.442695, %v1303_v13 }
 0x557   :  { %v536_v17 = vadd.f32 1.0, %v939_v14 }
 0x558   :  { %940 = vpow2.f32 %v846_v16 }
 0x559   :  { %942 = vrcp.f32 %v536_v17  ;;  %v551_v4 = vand.u32 2147483648, %v536_v17  ;;  %vm545_vm8 = vweird.f32 %v536_v17  ;;  %v549_v42 = vand.u32 2147483647, %v536_v17 }
 0x55b   :  { %v518_v19 = vpop.f32.mrf.mxu2  ;;  %v552_v48 = vor.u32 1.1754944e-38, %v551_v4  ;;  %vm550_vm11 = vcmp.eq.f32.partialorder %v549_v42, 8.507059e+37 }
 0x55c   :  { %v1306_v24 = vadd.f32 %v912_v7, %v518_v19 }
 0x55e   :  { %v941_v26 = vpop.eup %940  ;;  %v847_v27 = vmul.f32 -1.442695, %v1306_v24 }
 0x55f   :  { %v943_v51 = vpop.eup %942  ;;  %v537_v28 = vadd.f32 1.0, %v941_v26 }
 0x560   :  { %v541_v38 = vmul.f32 %v943_v51, %v536_v17  ;;  %944 = vpow2.f32 %v847_v27  ;;  %vm546_vm7 = vweird.f32 %v943_v51 }
 0x561   :  { %946 = vrcp.f32 %v537_v28  ;;  %vm547_vm9 = vmor %vm545_vm8, %vm546_vm7  ;;  %v566_v44 = vand.u32 2147483648, %v537_v28  ;;  %v564_v1 = vand.u32 2147483647, %v537_v28  ;;  %vm560_vm12 = vweird.f32 %v537_v28 }
 0x562   :  { %v542_v29 = vsub.f32 1.0, %v541_v38 }
 0x563   :  { %v521_v30 = vpop.f32.mrf.mxu2  ;;  %v567_v0 = vor.u32 1.1754944e-38, %v566_v44  ;;  %vm565_vm14 = vcmp.eq.f32.partialorder %v564_v1, 8.507059e+37 }
 0x564   :  { %v1309_v31 = vadd.f32 %v912_v7, %v521_v30  ;;  %v543_v32 = vmul.f32 %v943_v51, %v542_v29 }
 0x566   :  { %v945_v33 = vpop.eup %944  ;;  %v848_v36 = vmul.f32 -1.442695, %v1309_v31  ;;  %v544_v41 = vadd.f32 %v943_v51, %v543_v32 }
 0x567   :  { %v947_v37 = vpop.eup %946  ;;  %v538_v39 = vadd.f32 1.0, %v945_v33  ;;  %v423_v33 = vld [vmem:[%s1438_s7 + $0x18] sm:$0xff] }
 0x568   :  { %v556_v40 = vmul.f32 %v947_v37, %v537_v28  ;;  %948 = vpow2.f32 %v848_v36  ;;  %v548_v45 = vsel %vm547_vm9, %v943_v51, %v544_v41  ;;  %vm561_vm10 = vweird.f32 %v947_v37  ;;  %v422_v36 = vld [vmem:[%s1438_s7 + $0x10] sm:$0xff]  ;;  %673 = vmatpush.msra.mxu1 %v423_v33 }
 0x569   :  { %950 = vrcp.f32 %v538_v39  ;;  %v1312_v15 = vsel %vm550_vm11, %v552_v48, %v548_v45  ;;  %vm562_vm13 = vmor %vm560_vm12, %vm561_vm10  ;;  %v581_v6 = vand.u32 2147483648, %v538_v39  ;;  %vm575_vm2 = vweird.f32 %v538_v39 }
 0x56a   :  { %v557_v18 = vsub.f32 1.0, %v556_v40  ;;  %v600_v59 = vmul.f32 %v1312_v15, %v1273_v57  ;;  %v579_v8 = vand.u32 2147483647, %v538_v39  ;;  %674 = vmatpush.msra.mxu1 %v422_v36  ;;  %v420_v40 = vld [vmem:[%s1438_s7] sm:$0xff] }
 0x56b   :  { %v582_v16 = vor.u32 1.1754944e-38, %v581_v6 }
 0x56c   :  { %v558_v47 = vmul.f32 %v947_v37, %v557_v18  ;;  %vm580_vm5 = vcmp.eq.f32.partialorder %v579_v8, 8.507059e+37 }
 0x56e   :  { %v949_v49 = vpop.eup %948  ;;  %v559_v50 = vadd.f32 %v947_v37, %v558_v47 }
 0x56f   :  { %v951_v53 = vpop.eup %950  ;;  %v539_v3 = vadd.f32 1.0, %v949_v49  ;;  %v754_v49 = vld [vmem:[%s1439_s9 + $0x18] sm:$0xff] }
 0x570   :  { %v571_v46 = vmul.f32 %v951_v53, %v538_v39  ;;  %v563_v55 = vsel %vm562_vm13, %v947_v37, %v559_v50  ;;  %vm576_vm15 = vweird.f32 %v951_v53  ;;  %v753_v50 = vld [vmem:[%s1439_s9 + $0x10] sm:$0xff]  ;;  %783 = vmatpush.msra.mxu0 %v754_v49 }
 0x571   :  { %952 = vrcp.f32 %v539_v3  ;;  %v1314_v56 = vsel %vm565_vm14, %v567_v0, %v563_v55  ;;  %vm577_vm3 = vmor %vm575_vm2, %vm576_vm15  ;;  %v596_v10 = vand.u32 2147483648, %v539_v3  ;;  %v594_v57 = vand.u32 2147483647, %v539_v3 }
 0x572   :  { %v572_v58 = vsub.f32 1.0, %v571_v46  ;;  %v601_v60 = vmul.f32 %v1314_v56, %v1257_v54  ;;  %vm590_vm6 = vweird.f32 %v539_v3  ;;  %784 = vmatpush.msra.mxu0 %v753_v50 }
 0x573   :  { %v597_v19 = vor.u32 1.1754944e-38, %v596_v10  ;;  %vm595_vm8 = vcmp.eq.f32.partialorder %v594_v57, 8.507059e+37 }
 0x574   :  { %v906_v61 = vpack.i.bf16 %v600_v59, %v601_v60  ;;  %v573_v62 = vmul.f32 %v951_v53, %v572_v58  ;;  %v752_v58 = vld [vmem:[%s1439_s9 + $0x8] sm:$0xff]  ;;  %v718_v59 = vsub.f32 1.0, %v1312_v15 }
 0x575   :  { %785 = vmatpush.msra.mxu0 %v752_v58 }
 0x576   :  { %907 = vrot.lane.b32.xlu0 %v906_v61, %s964_s3  ;;  %v574_v5 = vadd.f32 %v951_v53, %v573_v62 }
 0x577   :  { %v953_v63 = vpop.eup %952 }
 0x578   :  { %v586_v2 = vmul.f32 %v953_v63, %v539_v3  ;;  %v578_v12 = vsel %vm577_vm3, %v951_v53, %v574_v5  ;;  %vm591_vm4 = vweird.f32 %v953_v63  ;;  %v715_v5 = vmul.f32 %v1199_v25, %v1314_v56 }
 0x579   :  { %v1321_v17 = vsel %vm580_vm5, %v582_v16, %v578_v12  ;;  %vm592_vm7 = vmor %vm590_vm6, %vm591_vm4 }
 0x57a   :  { %v587_v7 = vsub.f32 1.0, %v586_v2  ;;  %v602_v51 = vmul.f32 %v1321_v17, %v1249_v52  ;;  %v720_v25 = vsub.f32 1.0, %v1321_v17 }
 0x57c   :  { %v588_v14 = vmul.f32 %v953_v63, %v587_v7 }
 0x57e   :  { %v589_v54 = vadd.f32 %v953_v63, %v588_v14  ;;  %v716_v14 = vmul.f32 %v1209_v35, %v1321_v17 }
 0x580   :  { %v593_v26 = vsel %vm592_vm7, %v953_v63, %v589_v54  ;;  %v719_v63 = vsub.f32 1.0, %v1314_v56 }
 0x581   :  { %v1323_v27 = vsel %vm595_vm8, %v597_v19, %v593_v26 }
 0x582   :  { %v603_v28 = vmul.f32 %v1323_v27, %v1228_v34  ;;  %v421_v34 = vld [vmem:[%s1438_s7 + $0x8] sm:$0xff]  ;;  %v717_v8 = vmul.f32 %v1188_v11, %v1323_v27  ;;  %v913_v11 = vld [vmem:[%s1440_s10] ss:$0 sm:$0xff] }
 0x583   :  { %675 = vmatpush.msra.mxu1 %v421_v34 }
 0x584   :  { %v901_v38 = vpack.i.bf16 %v602_v51, %v603_v28 }
 0x585   :  { %676 = vmatpush.msra.mxu1 %v420_v40 }
 0x586   :  { %902 = vrot.lane.b32.xlu2 %v901_v38, %s964_s3 }
 0x5e0   :  { %v903_v29 = vpop.permute.xlu2 %902 }
 0x5e1   :  { %v904_v30 = vunpack.i.l.bf16 %v903_v29  ;;  %v905_v32 = vunpack.i.h.bf16 %v903_v29 }
 0x5e3   :  { %632 = vmatpush.msra.mxu3 %v904_v30 }
 0x5e5   :  { %633 = vmatpush.msra.mxu3 %v905_v32 }
 0x5e8   :  { %v908_v52 = vpop.permute.xlu0 %907 }
 0x5e9   :  { %v909_v37 = vunpack.i.l.bf16 %v908_v52  ;;  %v910_v39 = vunpack.i.h.bf16 %v908_v52 }
 0x5eb   :  { %634 = vmatpush.msra.mxu3 %v909_v37 }
 0x5ed   :  { %635 = vmatpush.msra.mxu3 %v910_v39 }
 0x5ee   :  { %849 = vmatmul.msk.f32.vlgmr.msra.gmra.mxu3 %vm83_vm1, %v1074_v20 }
 0x5f6   :  { %850 = vmatmul.msk.f32.gmra.mxu3 %vm83_vm1, %v1079_v21 }
 0x5fe   :  { %851 = vmatmul.msk.f32.gmra.mxu3 %vm83_vm1, %v1084_v22 }
 0x606   :  { %852 = vmatmul.msk.f32.gmra.mxu3 %vm83_vm1, %v1089_v23 }
 0x671   :  { %v637_v41 = vpop.f32.mrf.mxu3 }
 0x672   :  { %853 = vmatmul.msk.f32.vlgmr.msra.gmra.mxu1 %vm83_vm1, %v637_v41 }
 0x679   :  { %v640_v4 = vpop.f32.mrf.mxu3 }
 0x67a   :  { %854 = vmatmul.msk.f32.gmra.mxu1 %vm83_vm1, %v640_v4 }
 0x681   :  { %v643_v20 = vpop.f32.mrf.mxu3 }
 0x682   :  { %855 = vmatmul.msk.f32.gmra.mxu1 %vm83_vm1, %v643_v20 }
 0x689   :  { %v646_v21 = vpop.f32.mrf.mxu3 }
 0x68a   :  { %856 = vmatmul.msk.f32.gmra.mxu1 %vm83_vm1, %v646_v21 }
 0x6ef   :  { %v678_v22 = vpop.f32.mrf.mxu1 }
 0x6f0   :  { %694 = vrot.lane.b32.xlu1 %v678_v22, %s965_s27 }
 0x6f7   :  { %v681_v23 = vpop.f32.mrf.mxu1 }
 0x6f8   :  { %696 = vrot.lane.b32.xlu2 %v681_v23, %s965_s27 }
 0x6ff   :  { %v684_v18 = vpop.f32.mrf.mxu1 }
 0x700   :  { %698 = vrot.lane.b32.xlu0 %v684_v18, %s965_s27 }
 0x707   :  { %v687_v42 = vpop.f32.mrf.mxu1 }
 0x708   :  { %700 = vrot.lane.b32.xlu1 %v687_v42, %s965_s27 }
 0x752   :  { %v697_v44 = vpop.permute.xlu2 %696 }
 0x753   :  { %v707_v45 = vadd.f32 %v697_v44, %v1303_v13 }
 0x755   :  { %954 = vtanh.f32 %v707_v45 }
 0x75b   :  { %v955_v47 = vpop.eup %954 }
 0x75c   :  { %728 = vrot.lane.b32.xlu0 %v955_v47, %s965_s27 }
 0x762   :  { %v695_v1 = vpop.permute.xlu1 %694 }
 0x763   :  { %v706_v48 = vadd.f32 %v695_v1, %v1300_v9 }
 0x765   :  { %956 = vtanh.f32 %v706_v48 }
 0x76b   :  { %v957_v53 = vpop.eup %956 }
 0x76c   :  { %726 = vrot.lane.b32.xlu2 %v957_v53, %s965_s27 }
 0x772   :  { %v699_v13 = vpop.permute.xlu0 %698 }
 0x773   :  { %v708_v3 = vadd.f32 %v699_v13, %v1306_v24  ;;  %v751_v24 = vld [vmem:[%s1439_s9] sm:$0xff] }
 0x774   :  { %786 = vmatpush.msra.mxu0 %v751_v24 }
 0x775   :  { %958 = vtanh.f32 %v708_v3 }
 0x77a   :  { %v701_v0 = vpop.permute.xlu1 %700 }
 0x77b   :  { %v959_v9 = vpop.eup %958  ;;  %v709_v46 = vadd.f32 %v701_v0, %v1309_v31  ;;  %v714_v31 = vmul.f32 %v1217_v43, %v1312_v15  ;;  %v721_v43 = vsub.f32 1.0, %v1323_v27 }
 0x77c   :  { %730 = vrot.lane.b32.xlu1 %v959_v9, %s965_s27 }
 0x77d   :  { %960 = vtanh.f32 %v709_v46 }
 0x783   :  { %v961_v55 = vpop.eup %960 }
 0x784   :  { %732 = vrot.lane.b32.xlu2 %v961_v55, %s965_s27 }
 0x7c6   :  { %v727_v60 = vpop.permute.xlu2 %726 }
 0x7c7   :  { %v738_v61 = vmul.f32 %v727_v60, %v718_v59 }
 0x7c9   :  { %v742_v62 = vadd.f32 %v738_v61, %v714_v31 }
 0x7cb   :  { %857 = vst.msk [vmem:[%s1435_s12 + $0x20] sm:$0xff] %vm83_vm1, %v742_v62  ;;  %861 = vmatmul.msk.f32.vlgmr.msra.gmra.mxu0 %vm83_vm1, %v742_v62 }
 0x7ce   :  { %v729_v2 = vpop.permute.xlu0 %728 }
 0x7cf   :  { %v739_v6 = vmul.f32 %v729_v2, %v719_v63 }
 0x7d1   :  { %v743_v7 = vadd.f32 %v739_v6, %v715_v5 }
 0x7d3   :  { %858 = vst.msk [vmem:[%s1435_s12 + $0x28] sm:$0xff] %vm83_vm1, %v743_v7  ;;  %862 = vmatmul.msk.f32.gmra.mxu0 %vm83_vm1, %v743_v7 }
 0x7de   :  { %v733_v15 = vpop.permute.xlu2 %732 }
 0x7df   :  { %v741_v10 = vmul.f32 %v733_v15, %v721_v43 }
 0x7e1   :  { %v745_v12 = vadd.f32 %v741_v10, %v717_v8 }
 0x7e3   :  { %860 = vst.msk [vmem:[%s1435_s12 + $0x38] sm:$0xff] %vm83_vm1, %v745_v12 }
 0x7ee   :  { %v731_v56 = vpop.permute.xlu1 %730 }
 0x7ef   :  { %v740_v57 = vmul.f32 %v731_v56, %v720_v25 }
 0x7f1   :  { %v744_v16 = vadd.f32 %v740_v57, %v716_v14 }
 0x7f3   :  { %859 = vst.msk [vmem:[%s1435_s12 + $0x30] sm:$0xff] %vm83_vm1, %v744_v16  ;;  %863 = vmatmul.msk.f32.gmra.mxu0 %vm83_vm1, %v744_v16 }
 0x7fb   :  { %864 = vmatmul.msk.f32.gmra.mxu0 %vm83_vm1, %v745_v12 }
 0x848   :  { %v788_v54 = vpop.f32.mrf.mxu0 }
 0x849   :  { %v789_v19 = vadd.f32 %v913_v11, %v788_v54 }
 0x84b   :  { %800 = vst.msk [vmem:[%s1441_s11] sm:$0xff] %vm78_vm0, %v789_v19 }
 0x850   :  { %v791_v35 = vpop.f32.mrf.mxu0 }
 0x851   :  { %v792_v17 = vadd.f32 %v913_v11, %v791_v35 }
 0x853   :  { %801 = vst.msk [vmem:[%s1441_s11 + $0x8] sm:$0xff] %vm78_vm0, %v792_v17 }
 0x870   :  { %v794_v26 = vpop.f32.mrf.mxu0 }
 0x871   :  { %v795_v27 = vadd.f32 %v913_v11, %v794_v26 }
 0x873   :  { %802 = vst.msk [vmem:[%s1441_s11 + $0x10] sm:$0xff] %vm78_vm0, %v795_v27 }
 0x878   :  { %v797_v51 = vpop.f32.mrf.mxu0 }
 0x879   :  { %v798_v28 = vadd.f32 %v913_v11, %v797_v51 }
 0x87b   :  { %803 = vst.msk [vmem:[%s1441_s11 + $0x18] sm:$0xff] %vm78_vm0, %v798_v28 }

</bundles_post_ra>
